<compile_context>
chip_gen: v7x
topology: tpu7x:2x2x1
jax: 0.10.0
libtpu: 0.0.40
codegen_flags: <defaults>
</compile_context>

<pallas_src>
import jax
import jax.numpy as jnp
from jax.experimental import pallas as pl
from jax.experimental.pallas import tpu as pltpu


def mlp_kernel(x_ref, w1_ref, b1_ref, w2_ref, b2_ref, o_ref):
    # x_ref : (1, N_pad)  lane-dense batch row
    # w1_ref: (H, 1)      first-layer weights as a column (F == 1)
    # b1_ref: (H, 1)
    # w2_ref: (H, 1)      second-layer weights as a column (O == 1)
    # b2_ref: (1, 1) in SMEM (scalar)
    # o_ref : (1, N_pad)  lane-dense output row
    x_row = x_ref[...]                                   # (1, N_pad)
    w1c = w1_ref[...]                                    # (H, 1)
    b1c = b1_ref[...]                                    # (H, 1)
    w2c = w2_ref[...]                                    # (H, 1)

    # hidden^T[j, n] = relu(w1[j] * x[n] + b1[j])        -> (H, N_pad), pure VPU
    h_t = jnp.maximum(w1c * x_row + b1c, 0.0)

    # out^T[0, n] = sum_j w2[j] * h^T[j, n] + b2         -> (1, N_pad)
    out_row = jnp.sum(w2c * h_t, axis=0, keepdims=True) + b2_ref[0, 0]

    o_ref[...] = out_row.astype(o_ref.dtype)


def net_forward(x, w1, b1, w2, b2):
    """Forward pass of Net.

    x : (N, 1) float32
    w1: (1, H)  (in_features, out_features) of the hidden Linear
    b1: (H,)
    w2: (H, 1)  (in_features, out_features) of the predict Linear
    b2: (1,)
    returns (N, 1)
    """
    N, F = x.shape
    H = w1.shape[1]
    O = w2.shape[1]
    assert F == 1 and O == 1, "kernel is specialized for n_feature=1, n_output=1"

    # Pad batch to a full 128-lane tile; batch lives on the lane axis.
    n_pad = max(128, ((N + 127) // 128) * 128)
    x_row = jnp.zeros((1, n_pad), x.dtype).at[0, :N].set(x[:, 0])

    # Column layouts (H along sublanes, H=32 is a multiple of 8).
    w1_col = w1.reshape(H, 1)
    b1_col = b1.reshape(H, 1)
    w2_col = w2.reshape(H, 1)
    b2_s = b2.reshape(1, 1)

    vmem = pl.BlockSpec(memory_space=pltpu.MemorySpace.VMEM)
    smem = pl.BlockSpec(memory_space=pltpu.MemorySpace.SMEM)

    out_row = pl.pallas_call(
        mlp_kernel,
        out_shape=jax.ShapeDtypeStruct((1, n_pad), x.dtype),
        in_specs=[vmem, vmem, vmem, vmem, smem],
        out_specs=vmem,
    )(x_row, w1_col, b1_col, w2_col, b2_s)

    # Slice off the padded tail and restore (N, 1). Free layout plumbing.
    return out_row[0, :N].reshape(N, O)
    # TODO(synk): if this forward is called many times (training loop / many
    # grids), stack B instances along the sublane axis and run one pallas_call
    # to amortize the ~0.35-1 us fixed launch cost (10-100x throughput lever).


def init_params(key, n_feature, n_hidden, n_output):
    """Deterministic init mimicking PyTorch's U(-1/sqrt(fan_in), 1/sqrt(fan_in))."""
    k1, k2, k3, k4 = jax.random.split(key, 4)
    bound1 = 1.0 / jnp.sqrt(n_feature)
    bound2 = 1.0 / jnp.sqrt(n_hidden)
    # stored as (in, out) so x @ W matches torch's x @ W.T semantics
    w1 = jax.random.uniform(k1, (n_feature, n_hidden), jnp.float32, -bound1, bound1)
    b1 = jax.random.uniform(k2, (n_hidden,), jnp.float32, -bound1, bound1)
    w2 = jax.random.uniform(k3, (n_hidden, n_output), jnp.float32, -bound2, bound2)
    b2 = jax.random.uniform(k4, (n_output,), jnp.float32, -bound2, bound2)
    return w1, b1, w2, b2


if __name__ == "__main__":
    n_feature, n_hidden, n_output = 1, 32, 1

    # Same input as the original script: x = unsqueeze(linspace(-1, 1, 100), 1)
    x = jnp.linspace(-1.0, 1.0, 100, dtype=jnp.float32).reshape(100, 1)

    key = jax.random.PRNGKey(0)
    w1, b1, w2, b2 = init_params(key, n_feature, n_hidden, n_output)

    out = net_forward(x, w1, b1, w2, b2)
    out = jax.block_until_ready(out)

    # Reference in plain JAX to sanity-check semantics.
    ref = jnp.maximum(x @ w1 + b1[None, :], 0.0) @ w2 + b2[None, :]
    assert out.shape == (100, n_output)
    assert jnp.allclose(out, ref, atol=1e-5, rtol=1e-5)

    print("KERNEL_OK")
</pallas_src>

<mosaic_0001>
module attributes {stable_mosaic.version = 11 : i64} {
  func.func @mlp_kernel(%arg0: memref<1x128xf32, #tpu.memory_space<vmem>>, %arg1: memref<32x1xf32, #tpu.memory_space<vmem>>, %arg2: memref<32x1xf32, #tpu.memory_space<vmem>>, %arg3: memref<32x1xf32, #tpu.memory_space<vmem>>, %arg4: memref<1x1xf32, #tpu.memory_space<smem>>, %arg5: memref<1x128xf32, #tpu.memory_space<vmem>>) attributes {dimension_semantics = [], scalar_prefetch = 0 : i64, scratch_operands = 0 : i64, tpu.core_type = #tpu.core_type<tc>} {
    %c0 = arith.constant 0 : index
    %c0_0 = arith.constant 0 : index
    %0 = vector.load %arg0[%c0, %c0_0] : memref<1x128xf32, #tpu.memory_space<vmem>>, vector<1x128xf32>
    %c0_1 = arith.constant 0 : index
    %c0_2 = arith.constant 0 : index
    %1 = vector.load %arg1[%c0_1, %c0_2] : memref<32x1xf32, #tpu.memory_space<vmem>>, vector<32x1xf32>
    %c0_3 = arith.constant 0 : index
    %c0_4 = arith.constant 0 : index
    %2 = vector.load %arg2[%c0_3, %c0_4] : memref<32x1xf32, #tpu.memory_space<vmem>>, vector<32x1xf32>
    %c0_5 = arith.constant 0 : index
    %c0_6 = arith.constant 0 : index
    %3 = vector.load %arg3[%c0_5, %c0_6] : memref<32x1xf32, #tpu.memory_space<vmem>>, vector<32x1xf32>
    %4 = vector.broadcast %1 : vector<32x1xf32> to vector<32x128xf32>
    %5 = vector.broadcast %0 : vector<1x128xf32> to vector<32x128xf32>
    %6 = arith.mulf %4, %5 : vector<32x128xf32>
    %7 = vector.broadcast %2 : vector<32x1xf32> to vector<32x128xf32>
    %8 = arith.addf %6, %7 : vector<32x128xf32>
    %cst = arith.constant 0.000000e+00 : f32
    %9 = vector.broadcast %cst : f32 to vector<32x128xf32>
    %10 = arith.maximumf %8, %9 : vector<32x128xf32>
    %11 = vector.broadcast %3 : vector<32x1xf32> to vector<32x128xf32>
    %12 = arith.mulf %11, %10 : vector<32x128xf32>
    %cst_7 = arith.constant dense<0.000000e+00> : vector<128xf32>
    %13 = vector.multi_reduction <add>, %12, %cst_7 [0] : vector<32x128xf32> to vector<128xf32>
    %14 = vector.shape_cast %13 : vector<128xf32> to vector<1x128xf32>
    %c0_8 = arith.constant 0 : index
    %c0_9 = arith.constant 0 : index
    %15 = memref.load %arg4[%c0_8, %c0_9] : memref<1x1xf32, #tpu.memory_space<smem>>
    %16 = vector.broadcast %15 : f32 to vector<1x128xf32>
    %17 = arith.addf %14, %16 : vector<1x128xf32>
    %c0_10 = arith.constant 0 : index
    %c0_11 = arith.constant 0 : index
    %18 = vector.load %arg5[%c0_10, %c0_11] : memref<1x128xf32, #tpu.memory_space<vmem>>, vector<1x128xf32>
    tpu.vector_store %arg5[%c0_10, %c0_11], %17 {strides = array<i32>} : memref<1x128xf32, #tpu.memory_space<vmem>>, vector<1x128xf32>,
    return
  }
}

</mosaic_0001>

<bundles_post_ra>
// kernel: tpu_custom_call.1
= control target key start
LH: loop header
LB: loop body
LE: loop exit
PB: predicated region body
PF: predicated region fallthrough
CT: control target
= control target key end

     0   :  { %v173_v2 = vmov 0   ;;  %s259_s0 = inlined_call_operand.vmem [shape: f32[1,128], index: 0, kind: input, shape index: {}]   ;;  %s260_s1 = inlined_call_operand.vmem [shape: f32[32,1], index: 1, kind: input, shape index: {}]   ;;  %s261_s2 = inlined_call_operand.vmem [shape: f32[32,1], index: 2, kind: input, shape index: {}]   ;;  %s262_s3 = inlined_call_operand.vmem [shape: f32[32,1], index: 3, kind: input, shape index: {}]   ;;  %s263_s4 = inlined_call_operand.<no memory space> [shape: f32[1,1], index: 4, kind: input, shape index: {}]   ;;  %s264_s5 = inlined_call_operand.hbm [shape: f32[1,128], index: 5, kind: output, shape index: {}]  }
   0x1   :  { %v25_v0 = vld [vmem:[%s260_s1 + $0x10] sm:$0xff]  ;;  %v23_v1 = vld [vmem:[%s260_s1] sm:$0xff]  ;;  %148 = vset.pattern.permute.xlu1 %v173_v2  ;;  %147 = vset.pattern.permute.xlu0 %v173_v2  ;;  %v24_v4 = vld [vmem:[%s260_s1 + $0x8] sm:$0xff] }
   0x2   :  { %47 = vperm.xlu1 %148, %v25_v0   ;;  %37 = vperm.xlu0 %147, %v23_v1   ;;  %v27_v3 = vld [vmem:[%s261_s2] sm:$0xff] }
   0x3   :  { %11 = vsyncpa [#allocation4], 0  ;;  %v26_v5 = vld [vmem:[%s260_s1 + $0x18] sm:$0xff]  ;;  %v28_v6 = vld [vmem:[%s261_s2 + $0x8] sm:$0xff]  ;;  %v127_v50 = vstv %s263_s4  ;;  %s174_s17 = smov [#allocation3]  }
   0x4   :  { %v30_v7 = vld [vmem:[%s261_s2 + $0x18] sm:$0xff]  ;;  %v29_v8 = vld [vmem:[%s261_s2 + $0x10] sm:$0xff]  ;;  %v32_v9 = vld [vmem:[%s262_s3 + $0x8] sm:$0xff]  ;;  %s136_s18 = sshll.u32 %s174_s17, 4  ;;  %s137_s18 = int_to_ptr.vmem [resolvable:$true] %s136_s18 }
   0x5   :  { %v31_v10 = vld [vmem:[%s262_s3] sm:$0xff]  ;;  %v34_v11 = vld [vmem:[%s262_s3 + $0x18] sm:$0xff]  ;;  %v33_v12 = vld [vmem:[%s262_s3 + $0x10] sm:$0xff]  ;;  %s149_s19 = scalar_lea.vmem %s137_s18, 16  ;;  %s153_s20 = scalar_lea.vmem %s137_s18, 32 }
   0x6   :  { %67 = vperm.xlu1 %148, %v27_v3   ;;  %42 = vperm.xlu0 %147, %v24_v4   ;;  %v144_v17 = vld [vmem:[%s259_s0] ss:$0 sm:$0xff]  ;;  %p150_p0 = scmp.ne.s32.totalorder %s137_s18, %s149_s19  ;;  %p154_p1 = scmp.lt.s32.totalorder %s137_s18, %s137_s18 }
   0x7   :  { %p155_p2 = scmp.lt.s32.totalorder %s153_s20, %s149_s19 }
   0x9   :  { %p156_p3 = por %p155_p2, %p154_p1 }
   0xa   :  { %52 = vperm.xlu1 %148, %v26_v5   ;;  %72 = vperm.xlu0 %147, %v28_v6  }
   0xb   :  { %p157_p4 = pnand %p156_p3, %p150_p0 }
   0xe   :  { %82 = vperm.xlu1 %148, %v30_v7   ;;  %77 = vperm.xlu0 %147, %v29_v8  }
  0x12   :  { %100 = vperm.xlu1 %148, %v32_v9   ;;  %95 = vperm.xlu0 %147, %v31_v10  }
  0x16   :  { %110 = vperm.xlu1 %148, %v34_v11   ;;  %105 = vperm.xlu0 %147, %v33_v12  }
  0x81   :  { %v48_v13 = vpop.permute.xlu1 %47  ;;  %v38_v14 = vpop.permute.xlu0 %37 }
  0x82   :  { %v61_v20 = vmul.f32 %v144_v17, %v38_v14  ;;  %v63_v26 = vmul.f32 %v144_v17, %v48_v13 }
  0x85   :  { %v68_v15 = vpop.permute.xlu1 %67  ;;  %v43_v16 = vpop.permute.xlu0 %42 }
  0x86   :  { %v62_v21 = vmul.f32 %v144_v17, %v43_v16  ;;  %v85_v22 = vadd.f32 %v68_v15, %v61_v20 }
  0x88   :  { %v89_v27 = vmax.f32 %v85_v22, 0.0 }
  0x89   :  { %v53_v18 = vpop.permute.xlu1 %52  ;;  %v73_v19 = vpop.permute.xlu0 %72 }
  0x8a   :  { %v86_v23 = vadd.f32 %v73_v19, %v62_v21  ;;  %v64_v28 = vmul.f32 %v144_v17, %v53_v18 }
  0x8c   :  { %v90_v29 = vmax.f32 %v86_v23, 0.0 }
  0x8d   :  { %v83_v24 = vpop.permute.xlu1 %82  ;;  %v78_v25 = vpop.permute.xlu0 %77 }
  0x8e   :  { %v87_v30 = vadd.f32 %v78_v25, %v63_v26  ;;  %v88_v33 = vadd.f32 %v83_v24, %v64_v28 }
  0x90   :  { %v91_v36 = vmax.f32 %v87_v30, 0.0  ;;  %v92_v39 = vmax.f32 %v88_v33, 0.0 }
  0x91   :  { %v101_v31 = vpop.permute.xlu1 %100  ;;  %v96_v32 = vpop.permute.xlu0 %95 }
  0x92   :  { %v114_v34 = vmul.f32 %v101_v31, %v90_v29  ;;  %v113_v35 = vmul.f32 %v96_v32, %v89_v27 }
  0x94   :  { %v117_v40 = vadd.f32 %v114_v34, %v113_v35 }
  0x95   :  { %v111_v37 = vpop.permute.xlu1 %110  ;;  %v106_v38 = vpop.permute.xlu0 %105 }
  0x96   :  { %v115_v41 = vmul.f32 %v106_v38, %v91_v36  ;;  %v116_v42 = vmul.f32 %v111_v37, %v92_v39 }
  0x98   :  { %v118_v43 = vadd.f32 %v117_v40, %v115_v41 }
  0x9a   :  { %v119_v44 = vadd.f32 %v118_v43, %v116_v42 }
  0x9c   :  { %v120_v45 = vrot.slane %v119_v44, 4 }
  0x9e   :  { %v121_v46 = vadd.f32 %v120_v45, %v119_v44 }
  0xa0   :  { %v122_v47 = vrot.slane %v121_v46, 2 }
  0xa2   :  { %v123_v48 = vadd.f32 %v122_v47, %v121_v46 }
  0xa4   :  { %v124_v49 = vrot.slane %v123_v48, 1 }
  0xa6   :  { %v125_v51 = vadd.f32 %v124_v49, %v123_v48 }
  0xa8   :  { %v128_v52 = vadd.f32 %v127_v50, %v125_v51 }
  0xaa   :  { %129 = vst [vmem:[#allocation3] sm:$0x1] %v128_v52 }
  0xab   :  { %160 = shalt.err (!%p157_p4)
}
  0xac   :  { %s161_s23 = scalar_lea.hbm %s264_s5, 16 }
  0xad   :  { %p162_p5 = scmp.ne.s32.totalorder %s264_s5, %s161_s23  ;;  %p165_p6 = scmp.lt.u32.totalorder %s161_s23, %s264_s5 }
  0xaf   :  { %p167_p7 = pnand %p165_p6, %p162_p5 }
  0xb1   :  { %170 = shalt.err (!%p167_p7)
}
  0xb2   :  { %139 = dma.vmem_to_hbm [thread:$0]  %s137_s18, 16, %s264_s5, [#allocation4]  }
  0xb3   :  { %171 = dma.done.wait [#allocation4], 16  }
  0xb4   :  { %172 = vsyncadd [#allocation4], 4294967280 }
  0xb5   :  { %143 = vsyncpa [#allocation4], 1 }

</bundles_post_ra>
